<compile_context>
chip_gen: v7x
topology: tpu7x:2x2x1
jax: 0.10.0
libtpu: 0.0.40
codegen_flags: <defaults>
</compile_context>

<pallas_src>
import functools

import jax
import jax.numpy as jnp
from jax.experimental import pallas as pl
from jax.experimental.pallas import tpu as pltpu


def _round_up(x, m):
    return (x + m - 1) // m * m


# ---------------------------------------------------------------------------
# Pallas kernel: one grid step == one (batch element, L_out tile).
# ---------------------------------------------------------------------------
def _conv1d_kernel(x_ref, w_ref, b_ref, out_ref):
    # x_ref:   (1, C_in*K, TL)  bf16/f32 im2col columns for this (b, L tile)
    # w_ref:   (C_out, C_in*K)  bf16/f32 flattened taps (constant index_map)
    # b_ref:   (C_out, 1)       f32 bias
    # out_ref: (1, C_out, TL)   f32, lane-dense along L
    acc = jnp.dot(w_ref[...], x_ref[0], preferred_element_type=jnp.float32)
    out_ref[0] = acc + b_ref[...]


# ---------------------------------------------------------------------------
# Wrapper
# ---------------------------------------------------------------------------
@functools.partial(
    jax.jit,
    static_argnames=("stride", "padding", "dilation", "operand_dtype"))
def conv_norm_forward(signal, weight, bias, *, stride=1, padding=None,
                      dilation=1, operand_dtype=jnp.bfloat16):
    """ConvNorm.forward.

    signal: (B, C_in, L), weight: (C_out, C_in, K) (PyTorch Conv1d layout),
    bias: (C_out,) or None.  Returns (B, C_out, L_out) float32.
    """
    B, C_in, L = signal.shape
    C_out, C_in_w, K = weight.shape
    assert C_in_w == C_in
    if padding is None:
        assert K % 2 == 1
        padding = dilation * (K - 1) // 2

    L_pad = L + 2 * padding
    L_out = (L_pad - dilation * (K - 1) - 1) // stride + 1
    assert L_out >= 1
    CK = C_in * K

    # --- wrapper-side im2col: (B, C_in, L) -> (B, C_in*K, L_out) ------------
    x_pad = signal.astype(jnp.float32)
    if padding:
        x_pad = jnp.pad(x_pad, ((0, 0), (0, 0), (padding, padding)))
    taps = [
        jax.lax.slice(
            x_pad,
            (0, 0, k * dilation),
            (B, C_in, k * dilation + (L_out - 1) * stride + 1),
            (1, 1, stride))
        for k in range(K)
    ]
    # cols[b, c, k, l] = x_pad[b, c, l*stride + k*dilation]
    cols = jnp.stack(taps, axis=2).reshape(B, CK, L_out)

    # --- L_out tiling: one full-length tile if short, else lane-dense 1024 --
    if L_out <= 2048:
        TL = L_out
    else:
        TL = 1024                          # multiple of 128 -> unmasked stores
    L_out_p = _round_up(L_out, TL)
    num_lt = L_out_p // TL
    if L_out_p != L_out:
        cols = jnp.pad(cols, ((0, 0), (0, 0), (0, L_out_p - L_out)))

    cols = cols.astype(operand_dtype)
    w_flat = weight.reshape(C_out, CK).astype(operand_dtype)  # idx c*K + k
    if bias is None:
        bias = jnp.zeros((C_out,), jnp.float32)
    b_col = bias.astype(jnp.float32).reshape(C_out, 1)

    # --- VMEM budget from actual block sizes (kept << v7x's 64 MiB) ---------
    op_bytes = jnp.dtype(operand_dtype).itemsize
    x_blk = CK * TL * op_bytes
    o_blk = C_out * TL * 4
    w_blk = C_out * CK * op_bytes + C_out * 4
    vmem_limit = int(min(max(2 * (x_blk + o_blk) + 2 * w_blk + (8 << 20),
                             24 << 20), 48 << 20))

    out = pl.pallas_call(
        _conv1d_kernel,
        out_shape=jax.ShapeDtypeStruct((B, C_out, L_out_p), jnp.float32),
        grid_spec=pltpu.PrefetchScalarGridSpec(
            num_scalar_prefetch=0,
            grid=(B, num_lt),
            in_specs=[
                pl.BlockSpec((1, CK, TL), lambda b, lt: (b, 0, lt)),   # im2col
                pl.BlockSpec((C_out, CK), lambda b, lt: (0, 0)),       # weights
                pl.BlockSpec((C_out, 1), lambda b, lt: (0, 0)),        # bias
            ],
            out_specs=pl.BlockSpec((1, C_out, TL), lambda b, lt: (b, 0, lt)),
        ),
        compiler_params=pltpu.CompilerParams(
            dimension_semantics=("parallel", "parallel"),
            vmem_limit_bytes=vmem_limit,
        ),
    )(cols, w_flat, b_col)

    if L_out_p != L_out:
        out = out[:, :, :L_out]
    return out


# ---------------------------------------------------------------------------
# Pure-JAX reference (torch.nn.Conv1d semantics) for validation
# ---------------------------------------------------------------------------
def conv_norm_reference(signal, weight, bias, *, stride=1, padding=None,
                        dilation=1, operand_dtype=jnp.float32):
    C_out, C_in, K = weight.shape
    if padding is None:
        padding = dilation * (K - 1) // 2
    out = jax.lax.conv_general_dilated(
        signal.astype(operand_dtype), weight.astype(operand_dtype),
        window_strides=(stride,),
        padding=[(padding, padding)],
        rhs_dilation=(dilation,),
        dimension_numbers=("NCH", "OIH", "NCH"),
        preferred_element_type=jnp.float32)
    if bias is not None:
        out = out + bias.astype(jnp.float32)[None, :, None]
    return out


if __name__ == "__main__":
    key = jax.random.PRNGKey(0)
    k_x, k_w, k_b = jax.random.split(key, 3)

    # Small shapes consistent with the module: (B, C_in, L) signal.
    B, C_in, L = 2, 8, 32
    C_out, K = 16, 5

    x = jax.random.normal(k_x, (B, C_in, L), dtype=jnp.float32)
    # Xavier-uniform-like init scale (init affects values only, not semantics).
    limit = (6.0 / (C_in * K + C_out * K)) ** 0.5
    w = jax.random.uniform(k_w, (C_out, C_in, K),
                           minval=-limit, maxval=limit, dtype=jnp.float32)
    b = 0.1 * jax.random.normal(k_b, (C_out,), dtype=jnp.float32)

    configs = [
        dict(kernel_size=5, stride=1, padding=None, dilation=1),  # default "same"
        dict(kernel_size=3, stride=1, padding=2, dilation=2),     # dilated
        dict(kernel_size=5, stride=2, padding=2, dilation=1),     # strided
    ]
    for cfg in configs:
        Kc = cfg["kernel_size"]
        wc = w[:, :, :Kc]
        kwargs = dict(stride=cfg["stride"], padding=cfg["padding"],
                      dilation=cfg["dilation"])

        out = jax.block_until_ready(conv_norm_forward(x, wc, b, **kwargs))

        # Tight check vs reference with the same operand rounding (bf16 ops,
        # f32 accumulation) -> proves indexing / layout exactly.
        ref_bf16 = jax.block_until_ready(
            conv_norm_reference(x, wc, b, operand_dtype=jnp.bfloat16, **kwargs))
        # Loose check vs full-f32 reference -> proves semantics end to end.
        ref_f32 = jax.block_until_ready(
            conv_norm_reference(x, wc, b, operand_dtype=jnp.float32, **kwargs))

        assert out.shape == ref_f32.shape, (out.shape, ref_f32.shape)
        assert jnp.allclose(out, ref_bf16, atol=1e-3, rtol=1e-3), (
            cfg, float(jnp.max(jnp.abs(out - ref_bf16))))
        assert jnp.allclose(out, ref_f32, atol=1e-1, rtol=1e-1), (
            cfg, float(jnp.max(jnp.abs(out - ref_f32))))

    print("KERNEL_OK")
</pallas_src>

<mosaic_0001>
module attributes {stable_mosaic.version = 11 : i64} {
  func.func @_conv1d_kernel(%arg0: i32, %arg1: i32, %arg2: memref<1x40x32xbf16, #tpu.memory_space<vmem>>, %arg3: memref<16x40xbf16, #tpu.memory_space<vmem>>, %arg4: memref<16x1xf32, #tpu.memory_space<vmem>>, %arg5: memref<1x16x32xf32, #tpu.memory_space<vmem>>) attributes {dimension_semantics = [#tpu.dimension_semantics<parallel>, #tpu.dimension_semantics<parallel>], iteration_bounds = array<i64: 2, 1>, scalar_prefetch = 0 : i64, scratch_operands = 0 : i64, tpu.core_type = #tpu.core_type<tc>, window_params = [{transform_indices = @transform_0, window_bounds = array<i64: 1, 40, 32>}, {pipeline_mode = #tpu.pipeline_mode<synchronous>, transform_indices = @transform_1, window_bounds = array<i64: 16, 40>}, {pipeline_mode = #tpu.pipeline_mode<synchronous>, transform_indices = @transform_2, window_bounds = array<i64: 16, 1>}, {transform_indices = @transform_3, window_bounds = array<i64: 1, 16, 32>}]} {
    %c0 = arith.constant 0 : index
    %c0_0 = arith.constant 0 : index
    %0 = vector.load %arg3[%c0, %c0_0] : memref<16x40xbf16, #tpu.memory_space<vmem>>, vector<16x40xbf16>
    %c0_1 = arith.constant 0 : index
    %c0_2 = arith.constant 0 : index
    %c0_3 = arith.constant 0 : index
    %1 = vector.load %arg2[%c0_1, %c0_2, %c0_3] : memref<1x40x32xbf16, #tpu.memory_space<vmem>>, vector<1x40x32xbf16>
    %2 = vector.shape_cast %1 : vector<1x40x32xbf16> to vector<40x32xbf16>
    %cst = arith.constant dense<0.000000e+00> : vector<16x32xf32>
    %3 = tpu.matmul %0, %2, %cst {dimension_numbers = #tpu.dot_dimension_numbers<[1], [0], [0], [1], [0, 0, 1, 1], [], []>} : vector<16x40xbf16>, vector<40x32xbf16>, vector<16x32xf32> -> vector<16x32xf32>
    %c0_4 = arith.constant 0 : index
    %c0_5 = arith.constant 0 : index
    %4 = vector.load %arg4[%c0_4, %c0_5] : memref<16x1xf32, #tpu.memory_space<vmem>>, vector<16x1xf32>
    %5 = vector.broadcast %4 : vector<16x1xf32> to vector<16x32xf32>
    %6 = arith.addf %3, %5 : vector<16x32xf32>
    %c0_6 = arith.constant 0 : index
    %c0_7 = arith.constant 0 : index
    %c0_8 = arith.constant 0 : index
    %7 = vector.load %arg5[%c0_6, %c0_7, %c0_8] : memref<1x16x32xf32, #tpu.memory_space<vmem>>, vector<1x16x32xf32>
    %8 = vector.shape_cast %7 : vector<1x16x32xf32> to vector<16x32xf32>
    %9 = vector.shape_cast %6 : vector<16x32xf32> to vector<1x16x32xf32>
    tpu.vector_store %arg5[%c0_6, %c0_7, %c0_8], %9 {strides = array<i32>} : memref<1x16x32xf32, #tpu.memory_space<vmem>>, vector<1x16x32xf32>,
    return
  }
  func.func @transform_0(%arg0: i32, %arg1: i32) -> (i32, i32, i32) {
    %c0_i32 = arith.constant 0 : i32
    %c0_i32_0 = arith.constant 0 : i32
    return %arg0, %c0_i32, %arg1 : i32, i32, i32
  }
  func.func @transform_1(%arg0: i32, %arg1: i32) -> (i32, i32) {
    %c0_i32 = arith.constant 0 : i32
    %c0_i32_0 = arith.constant 0 : i32
    %c0_i32_1 = arith.constant 0 : i32
    return %c0_i32, %c0_i32_0 : i32, i32
  }
  func.func @transform_2(%arg0: i32, %arg1: i32) -> (i32, i32) {
    %c0_i32 = arith.constant 0 : i32
    %c0_i32_0 = arith.constant 0 : i32
    %c0_i32_1 = arith.constant 0 : i32
    return %c0_i32, %c0_i32_0 : i32, i32
  }
  func.func @transform_3(%arg0: i32, %arg1: i32) -> (i32, i32, i32) {
    %c0_i32 = arith.constant 0 : i32
    %c0_i32_0 = arith.constant 0 : i32
    return %arg0, %c0_i32, %arg1 : i32, i32, i32
  }
}

</mosaic_0001>

<bundles_post_ra>
// kernel: conv_norm_forward.1
= control target key start
LH: loop header
LB: loop body
LE: loop exit
PB: predicated region body
PF: predicated region fallthrough
CT: control target
= control target key end

     0   :  { %8 = vsyncpa [#allocation3], 0  ;;  %s707_s0 = inlined_call_operand.vmem [shape: bf16[2,40,32], index: 0, kind: input, shape index: {}]   ;;  %s708_s1 = inlined_call_operand.vmem [shape: bf16[16,40], index: 1, kind: input, shape index: {}]   ;;  %s709_s2 = inlined_call_operand.vmem [shape: f32[16,1], index: 2, kind: input, shape index: {}]   ;;  %s710_s3 = inlined_call_operand.hbm [shape: f32[2,16,32], index: 3, kind: output, shape index: {}]  }
   0x1   :  { %10 = vsyncpa [#allocation3 + $0x1], 0  ;;  %s583_s12 = smov 0   ;;  %s585_s13 = smov 0  }
   0x2   :  { %s587_s14 = smov 0   ;;  %s589_s15 = smov 0  }
   0x3   :  { %s591_s16 = smov 0   ;;  %s593_s17 = smov 0  }
   0x4 LB: > { %s379_s18 = sadd.s32 4294967295, %s555_s17   ;;  %s380_s19 = sadd.s32 4294967294, %s555_s17   ;;  %s555_s17 = sphi %s593_s17, %s16_s17   ;;  %s551_s16 = sphi %s591_s16, %s717_s16   ;;  %s547_s15 = sphi %s589_s15, %s716_s15   ;;  %s543_s14 = sphi %s587_s14, %s715_s14   ;;  %s539_s13 = sphi %s585_s13, %s714_s13   ;;  %s535_s12 = sphi %s583_s12, %s713_s12  }
   0x5   : > { %s28_s20 = sadd.s32 1, %s551_s16  ;;  %s107_s21 = sadd.s32 1, %s543_s14 }
   0x6   : > { %p30_p0 = scmp.ge.s32.totalorder %s28_s20, 2  ;;  %p117_p1 = scmp.ne.s32.totalorder %s543_s14, %s539_s13 }
   0x7   : > { %p118_p2 = scmp.eq.s32.totalorder %s379_s18, 1  ;;  %p123_p3 = scmp.ne.s32.totalorder %s539_s13, %s535_s12 }
   0x8   : > { %s719_s20 = smov (%p30_p0, %s28_s20), 0  ;;  %p124_p5 = scmp.eq.s32.totalorder %s380_s19, 1 }
   0x9   : > { %p623_p4 = por %p118_p2, %p117_p1  ;;  %s102_s23 = ssub.s32 %s551_s16, %s719_s20 }
   0xa   : > { %p383_p6 = scmp.ge.s32.totalorder %s555_s17, 1  ;;  %p105_p7 = scmp.eq.s32.totalorder %s102_s23, 0 }
   0xb   : > { %p630_p8 = por %p124_p5, %p123_p3  ;;  %p159_p9 = scmp.lt.s32.totalorder %s555_s17, 3 }
   0xc   : > { %s636_s25 = scalar_select %p105_p7, %s543_s14, %s107_s21  }
   0xd   : > { %p160_p10 = pnand %p383_p6, %p159_p9 }
   0xe   : > { %p186_p11 = scmp.lt.s32.totalorder (!%p160_p10), %s547_s15, 1  ;;  %v557_v0 = vmov (!%p160_p10), 0.0   ;;  %vm558_vm0 = vmmov (!%p160_p10), 0   ;;  %v202_v1 = vld [vmem:[%s709_s2] sm:$0xff] (!%p160_p10)  ;;  %v559_v2 = vmov (!%p160_p10), 0   ;;  %v203_v3 = vld [vmem:[%s709_s2 + $0x8] sm:$0xff] (!%p160_p10) }
   0xf   : > { %163 = sbr.rel (%p160_p10) target bundleno = 270 (0x10e), region = 32  ;;  %401 = vmatprep.subr.bf16.mxu0 (!%p160_p10), %v557_v0  ;;  %407 = vmatprep.mubr.msk.bf16.mxu0 (!%p160_p10), %vm558_vm0, %v557_v0  ;;  %vm238_vm1 = vcmask (!%p160_p10), 1043456   ;;  %v476_v8 = vld [vmem:[%s708_s1] sm:$0xff] (!%p160_p10)   ;;  %vm234_vm2 = vcmask (!%p160_p10), 326656   ;;  %s183_s10 = sand.u32 (!%p160_p10), 1, %s539_s13   ;;  %vm283_vm3 = vcmask (!%p160_p10), 261120  }
  0x10   : > { %472 = vset.pattern.permute.xlu0 (!%p160_p10), %v559_v2  ;;  %s384_s11 = sshll.u32 (!%p160_p10), %s183_s10, 4  ;;  %s396_s21 = sshll.u32 (!%p160_p10), %s547_s15, 8 }
  0x11   : > { %206 = vperm.xlu0 (!%p160_p10), %472, %v202_v1   ;;  %s185_s18 = scalar_lea.vmem (!%p160_p10), [#allocation2], %s384_s11  ;;  %s659_s27 = scalar_lea.hbm (!%p160_p10), %s710_s3, %s396_s21 }
  0x12   : > { %s301_s19 = sshll.u32 (!%p160_p10), %s185_s18, 4  ;;  %s654_s19 = int_to_ptr.vmem [resolvable:$true] %s301_s19 }
  0x15   : > { %211 = vperm.xlu0 (!%p160_p10), %472, %v203_v3  }
  0x16   : > { %s187_s28 = scalar_select %p186_p11, %s547_s15, 1 }
  0x17   : > { %s661_s15 = scalar_lea.sflag [#allocation3], %s183_s10 }
  0x18   : > { %s411_s29 = smul.u32 20, %s187_s28  ;;  %s477_s28 = scalar_lea.vmem %s654_s19, 256 }
  0x19   : > { %p478_p12 = scmp.ne.s32.totalorder %s654_s19, %s477_s28 }
  0x1a   : > { %s193_s7 = scalar_lea.vmem %s707_s0, %s411_s29  ;;  %s560_s29 = smov [#allocation2]  }
  0x1b   : > { %v473_v4 = vld [vmem:[%s193_s7] sm:$0xff]   ;;  %v474_v5 = vld [vmem:[%s193_s7 + $0x8] sm:$0xff]   ;;  %v475_v6 = vld [vmem:[%s193_s7 + $0x10] ss:$0 sps:$4 sm:$0xff]   ;;  %p479_p13 = pnand %p478_p12, %p623_p4  ;;  %s481_s30 = sshll.u32 %s560_s29, 4  ;;  %s482_s30 = int_to_ptr.vmem [resolvable:$false] %s481_s30 }
  0x1c   : > { %402 = vmatpush3.bf16.msra.mxu0 %v473_v4  ;;  %v240_v7 = vsel %vm238_vm1, %v475_v6, 0  ;;  %s483_s4 = scalar_lea.vmem %s482_s30, 512  ;;  %p484_p1 = scmp.lt.s32.totalorder %s654_s19, %s482_s30 }
  0x1d   : > { %403 = vmatprep.subr.bf16.mxu0 %v557_v0  ;;  %p480_p0 = pneg %p479_p13  ;;  %p485_p2 = scmp.lt.s32.totalorder %s483_s4, %s477_s28 }
  0x1f   : > { %p486_p3 = por %p485_p2, %p484_p1 }
  0x20   : > { %404 = vmatpush3.bf16.msra.mxu0 %v474_v5 }
  0x21   : > { %405 = vmatprep.subr.bf16.mxu0 %v557_v0  ;;  %p487_p5 = pnand %p486_p3, %p480_p0 }
  0x24   : > { %406 = vmatpush3.bf16.msra.mxu0 %v240_v7 }
  0x27   : > { %408 = vmatmul.mubr.msk.bf16.vlgmr.msra.gmra.mrb[0].mxu0 %vm234_vm2, %v476_v8 }
  0x90   : > { %v207_v9 = vpop.permute.xlu0 %206 }
  0x94   : > { %v212_v13 = vpop.permute.xlu0 %211 }
  0xfa   : > { %v276_v10 = vpop.f32.mrb[0].mxu0 }
  0xfb   : > { %v277_v11 = vadd.f32 %v276_v10, %v207_v9  ;;  %v409_v12 = vpop.f32.mrb[1].mxu0 }
  0xfc   : > { %v279_v14 = vpop.f32.mrb[2].mxu0 }
  0xfd   : > { %284 = vst.msk [vmem:[%s185_s18] sm:$0xff] %vm283_vm3, %v277_v11  ;;  %v280_v15 = vadd.f32 %v279_v14, %v212_v13  ;;  %v410_v16 = vpop.f32.mrb[3].mxu0 }
  0xff   : > { %285 = vst.msk [vmem:[%s185_s18 + $0x8] sm:$0xff] %vm283_vm3, %v280_v15 }
 0x100   : > { %490 = shalt.err (!%p487_p5)
}
 0x101   : > { %s491_s5 = scalar_lea.hbm %s659_s27, 256  ;;  %s495_s8 = scalar_lea.hbm %s710_s3, 512 }
 0x102   : > { %p492_p6 = scmp.ne.s32.totalorder %s659_s27, %s491_s5  ;;  %p496_p10 = scmp.lt.u32.totalorder %s659_s27, %s710_s3 }
 0x103   : > { %p497_p11 = scmp.lt.u32.totalorder %s495_s8, %s491_s5  ;;  %p499_p13 = scmp.lt.u32.totalorder %s491_s5, %s659_s27 }
 0x104   : > { %p493_p7 = pnand %p492_p6, %p623_p4 }
 0x105   : > { %p498_p12 = por %p497_p11, %p496_p10 }
 0x106   : > { %p494_p9 = pneg %p493_p7 }
 0x107   : > { %p500_p0 = por %p499_p13, %p498_p12 }
 0x109   : > { %p501_p1 = pnand %p500_p0, %p494_p9 }
 0x10b   : > { %504 = shalt.err (!%p501_p1)
}
 0x10c   : > { %s561_s11 = smov 128   ;;  %s562_s18 = smov 8  }
 0x10d   : > { %412 = dma.vmem_to_hbm [thread:$0]  (%p623_p4), %s654_s19, 256, %s659_s27, %s661_s15, %s561_s11, %s561_s11, %s562_s18  }
 0x10e PF: > { %p418_p2 = scmp.ge.s32.totalorder %s555_s17, 2  ;;  %s316_s21 = sand.u32 1, %s535_s12  }
 0x10f   : > { %s317_s23 = scalar_lea.sflag [#allocation3], %s316_s21 }
 0x110   : > { %p415_p3 = pnand %p418_p2, %p630_p8 }
 0x112   : > { %530 = dma.done.wait (!%p415_p3), %s317_s23, 256  }
 0x113   : > { %532 = vsyncadd (!%p415_p3), %s317_s23, 4294967040  ;;  %s16_s17 = sadd.s32 1, %s555_s17   ;;  %s713_s12 = smov %s539_s13 }
 0x114   : > { %p13_p5 = scmp.ge.s32.totalorder %s16_s17, 4   ;;  %s714_s13 = smov %s543_s14 }
 0x115   : > { %s715_s14 = smov %s636_s25  ;;  %s716_s15 = smov %s551_s16 }
 0x116   : > { %s717_s16 = smov %s719_s20  ;;  %15 = sbr.rel (!%p13_p5) target bundleno = 4 (0x4), region = 67 }
 0x11d   :  { %322 = vsyncpa [#allocation3], 1 }
 0x11e   :  { %324 = vsyncpa [#allocation3 + $0x1], 1 }

</bundles_post_ra>
